<compile_context>
chip_gen: v7x
topology: tpu7x:2x2x1
jax: 0.10.0
libtpu: 0.0.40
codegen_flags: <defaults>
</compile_context>

<pallas_src>
import functools
import math

import jax
import jax.numpy as jnp
from jax.experimental import pallas as pl
from jax.experimental.pallas import tpu as pltpu

_INV_SQRT2 = 1.0 / math.sqrt(2.0)


def _round_up(n, m):
    return ((n + m - 1) // m) * m


def _vmem_limit_bytes():
    """Generation-aware VMEM limit: ~80% of physical (v5e/v6e: ~102 MiB, v7x: ~51 MiB)."""
    cap = 64 * 1024 * 1024
    try:
        info = pltpu.get_tpu_info()
        cap = int(getattr(info, "vmem_capacity_bytes", cap))
    except Exception:
        pass
    return int(cap * 0.8)


def _layernorm_f32(x_ref, gamma_ref, beta_ref, *, eps, inv_e, e_true, e_pad):
    """Exact two-pass LayerNorm in f32 on one (tm, Ep) tile; padded lanes stay zero."""
    x = x_ref[...].astype(jnp.float32)
    mu = jnp.sum(x, axis=-1, keepdims=True) * inv_e          # padded lanes are zero
    if e_pad != e_true:
        lane = jax.lax.broadcasted_iota(jnp.int32, x.shape, 1)
        xc = jnp.where(lane < e_true, x - mu, 0.0)
    else:
        xc = x - mu
    var = jnp.sum(xc * xc, axis=-1, keepdims=True) * inv_e
    xn = xc * jax.lax.rsqrt(var + eps)
    return xn * gamma_ref[...] + beta_ref[...]                # gamma/beta zero in padding


def _gelu_exact(h):
    # Matches torch nn.GELU() default (erf formulation).
    return 0.5 * h * (1.0 + jax.lax.erf(h * _INV_SQRT2))


def _mlp_resident_kernel(x_ref, gamma_ref, beta_ref, w1_ref, b1_ref, w2_ref, b2_ref,
                         o_ref, *, eps, inv_e, e_true, e_pad):
    """Full-H plan: weights are VMEM-resident (constant block index), 1-D row-tile grid."""
    xn = _layernorm_f32(x_ref, gamma_ref, beta_ref,
                        eps=eps, inv_e=inv_e, e_true=e_true, e_pad=e_pad)
    h = jnp.dot(xn.astype(w1_ref.dtype), w1_ref[...],
                preferred_element_type=jnp.float32) + b1_ref[...]
    h = _gelu_exact(h)
    # Dropout (eval mode): identity.
    o_ref[...] = (jnp.dot(h.astype(w2_ref.dtype), w2_ref[...],
                          preferred_element_type=jnp.float32) + b2_ref[...]
                  ).astype(o_ref.dtype)


def _mlp_tiled_kernel(x_ref, gamma_ref, beta_ref, w1_ref, b1_ref, w2_ref, b2_ref,
                      o_ref, xn_ref, *, eps, inv_e, e_true, e_pad):
    """H-chunked plan: accumulate W2 partials directly into the resident f32 out block."""
    j = pl.program_id(1)

    @pl.when(j == 0)
    def _():
        xn = _layernorm_f32(x_ref, gamma_ref, beta_ref,
                            eps=eps, inv_e=inv_e, e_true=e_true, e_pad=e_pad)
        xn_ref[...] = xn.astype(xn_ref.dtype)      # cached for every H chunk
        o_ref[...] = jnp.zeros_like(o_ref)         # out block is resident across j

    h = jnp.dot(xn_ref[...], w1_ref[...],
                preferred_element_type=jnp.float32) + b1_ref[...]
    h = _gelu_exact(h)
    # Dropout (eval mode): identity.
    o_ref[...] += jnp.dot(h.astype(w2_ref.dtype), w2_ref[...],
                          preferred_element_type=jnp.float32)

    @pl.when(j == pl.num_programs(1) - 1)
    def _():
        o_ref[...] += b2_ref[...]


def prepare_params(params, *, compute_dtype=jnp.bfloat16, th=512, force_tiled=False):
    """Pad + cast weights/biases ONCE (not per forward call) and pick the execution plan."""
    gamma, beta, w1, b1, w2, b2 = (params[k] for k in
                                   ("gamma", "beta", "w1", "b1", "w2", "b2"))
    E, H = w1.shape
    Ep = _round_up(E, 128)
    Hp_min = _round_up(H, 128)
    wbytes = jnp.dtype(compute_dtype).itemsize
    vmem_limit = _vmem_limit_bytes()

    # Resident plan if both padded weight matrices fit in <~45% of the VMEM budget.
    resident = (not force_tiled) and (2 * Ep * Hp_min * wbytes <= int(0.45 * vmem_limit))
    if resident:
        th_eff = Hp = Hp_min
    else:
        th_eff = min(_round_up(th, 128), Hp_min)
        Hp = _round_up(H, th_eff)

    def pad(a, shape):
        return jnp.pad(a, [(0, t - s) for s, t in zip(a.shape, shape)])

    prep = {
        "gamma": pad(gamma.reshape(1, E), (1, Ep)).astype(jnp.float32),
        "beta": pad(beta.reshape(1, E), (1, Ep)).astype(jnp.float32),
        "w1": pad(w1, (Ep, Hp)).astype(compute_dtype),
        "b1": pad(b1.reshape(1, H), (1, Hp)).astype(jnp.float32),
        "w2": pad(w2, (Hp, Ep)).astype(compute_dtype),
        "b2": pad(b2.reshape(1, E), (1, Ep)).astype(jnp.float32),
        "meta": {"E": E, "H": H, "Ep": Ep, "Hp": Hp, "th": th_eff,
                 "resident": resident, "vmem_limit": vmem_limit,
                 "compute_dtype": compute_dtype},
    }
    return prep


def mlp_block_forward(x, prep, *, eps=1e-5, tm=512):
    """x: (B, S, E). prep: output of prepare_params. Returns (B, S, E) in x.dtype."""
    meta = prep["meta"]
    E, H, Ep, Hp, th_eff = meta["E"], meta["H"], meta["Ep"], meta["Hp"], meta["th"]
    resident, vmem_limit = meta["resident"], meta["vmem_limit"]
    cdt = meta["compute_dtype"]
    wbytes = jnp.dtype(cdt).itemsize

    B, S, E_in = x.shape
    assert E_in == E, "embedding dim mismatch with prepared params"
    N = B * S

    # ---- choose the row tile from a VMEM budget (big tiles -> high arithmetic intensity)
    if resident:
        fixed = 2 * Ep * Hp * wbytes + 4 * (Hp + 3 * Ep)            # weights + biases
        per_row = (Ep * 4 * 2           # x block, double-buffered f32
                   + Ep * 4 * 2         # out block, double-buffered f32
                   + Ep * 4             # layernorm temp
                   + Hp * 4 * 2)        # hidden activation temps (f32)
    else:
        fixed = 2 * 2 * Ep * th_eff * wbytes + 4 * (Hp + 3 * Ep)    # dbl-buffered W chunks
        per_row = (Ep * 4 * 2 + Ep * 4 * 2 + Ep * wbytes + th_eff * 4 * 2)
    budget = vmem_limit - fixed - (4 << 20)                          # headroom
    tm_max = max(8, (budget // per_row) // 8 * 8)
    tm_eff = max(8, min(tm, tm_max, _round_up(N, 8)))
    # Ensure >= 2 row tiles when possible so the 'parallel' axis feeds both v7x TCs.
    if N <= tm_eff and tm_eff > 8:
        tm_eff = max(8, _round_up(pl.cdiv(N, 2), 8))
    Np = _round_up(N, tm_eff)
    n_row_tiles = Np // tm_eff

    x2d = jnp.pad(x.reshape(N, E), ((0, Np - N), (0, Ep - E)))

    common_bytes = (x2d.size * 4 + Np * Ep * 4
                    + 4 * (Hp + 3 * Ep))
    if resident:
        weight_bytes = 2 * Ep * Hp * wbytes                # streamed once per call
    else:
        weight_bytes = 2 * Ep * Hp * wbytes * n_row_tiles  # re-streamed per row tile
    cost = pl.CostEstimate(flops=4 * N * E * H,
                           transcendentals=N * H,
                           bytes_accessed=common_bytes + weight_bytes)

    operands = (x2d, prep["gamma"], prep["beta"],
                prep["w1"], prep["b1"], prep["w2"], prep["b2"])

    if resident:
        out2d = pl.pallas_call(
            functools.partial(_mlp_resident_kernel, eps=eps, inv_e=1.0 / E,
                              e_true=E, e_pad=Ep),
            out_shape=jax.ShapeDtypeStruct((Np, Ep), jnp.float32),
            grid_spec=pltpu.PrefetchScalarGridSpec(
                num_scalar_prefetch=0,
                grid=(n_row_tiles,),
                in_specs=[
                    pl.BlockSpec((tm_eff, Ep), lambda i: (i, 0)),   # x rows
                    pl.BlockSpec((1, Ep), lambda i: (0, 0)),        # gamma
                    pl.BlockSpec((1, Ep), lambda i: (0, 0)),        # beta
                    pl.BlockSpec((Ep, Hp), lambda i: (0, 0)),       # W1 (VMEM-resident)
                    pl.BlockSpec((1, Hp), lambda i: (0, 0)),        # b1
                    pl.BlockSpec((Hp, Ep), lambda i: (0, 0)),       # W2 (VMEM-resident)
                    pl.BlockSpec((1, Ep), lambda i: (0, 0)),        # b2
                ],
                out_specs=pl.BlockSpec((tm_eff, Ep), lambda i: (i, 0)),
            ),
            compiler_params=pltpu.CompilerParams(
                dimension_semantics=("parallel",),
                vmem_limit_bytes=vmem_limit),
            cost_estimate=cost,
        )(*operands)
    else:
        out2d = pl.pallas_call(
            functools.partial(_mlp_tiled_kernel, eps=eps, inv_e=1.0 / E,
                              e_true=E, e_pad=Ep),
            out_shape=jax.ShapeDtypeStruct((Np, Ep), jnp.float32),
            grid_spec=pltpu.PrefetchScalarGridSpec(
                num_scalar_prefetch=0,
                grid=(n_row_tiles, Hp // th_eff),
                in_specs=[
                    pl.BlockSpec((tm_eff, Ep), lambda i, j: (i, 0)),   # x rows
                    pl.BlockSpec((1, Ep), lambda i, j: (0, 0)),        # gamma
                    pl.BlockSpec((1, Ep), lambda i, j: (0, 0)),        # beta
                    pl.BlockSpec((Ep, th_eff), lambda i, j: (0, j)),   # W1 H-chunk
                    pl.BlockSpec((1, th_eff), lambda i, j: (0, j)),    # b1 H-chunk
                    pl.BlockSpec((th_eff, Ep), lambda i, j: (j, 0)),   # W2 H-chunk
                    pl.BlockSpec((1, Ep), lambda i, j: (0, 0)),        # b2
                ],
                out_specs=pl.BlockSpec((tm_eff, Ep), lambda i, j: (i, 0)),
                scratch_shapes=[pltpu.VMEM((tm_eff, Ep), cdt)],        # cached LayerNorm out
            ),
            compiler_params=pltpu.CompilerParams(
                dimension_semantics=("parallel", "arbitrary"),
                vmem_limit_bytes=vmem_limit),
            cost_estimate=cost,
        )(*operands)

    return out2d[:N, :E].astype(x.dtype).reshape(B, S, E)


def init_params(key, embedding_dims, mlp_size, forward_mul):
    """Deterministic synthetic parameters matching the PyTorch module's shapes."""
    hidden = mlp_size * forward_mul
    k1, k2, k3, k4 = jax.random.split(key, 4)
    # nn.Linear default init: U(-1/sqrt(fan_in), 1/sqrt(fan_in)); weights stored (in, out).
    bound1 = 1.0 / math.sqrt(embedding_dims)
    bound2 = 1.0 / math.sqrt(hidden)
    return {
        "gamma": jnp.ones((embedding_dims,), jnp.float32),
        "beta": jnp.zeros((embedding_dims,), jnp.float32),
        "w1": jax.random.uniform(k1, (embedding_dims, hidden), jnp.float32,
                                 -bound1, bound1),
        "b1": jax.random.uniform(k2, (hidden,), jnp.float32, -bound1, bound1),
        "w2": jax.random.uniform(k3, (hidden, embedding_dims), jnp.float32,
                                 -bound2, bound2),
        "b2": jax.random.uniform(k4, (embedding_dims,), jnp.float32,
                                 -bound2, bound2),
    }


def _reference(x, params, eps=1e-5):
    """Plain-JAX f32 reference (LayerNorm -> Linear -> GELU -> Linear; eval dropout)."""
    mu = jnp.mean(x, axis=-1, keepdims=True)
    var = jnp.mean((x - mu) ** 2, axis=-1, keepdims=True)
    xn = (x - mu) / jnp.sqrt(var + eps) * params["gamma"] + params["beta"]
    h = xn @ params["w1"] + params["b1"]
    h = 0.5 * h * (1.0 + jax.lax.erf(h / math.sqrt(2.0)))
    return h @ params["w2"] + params["b2"]


if __name__ == "__main__":
    # Small shapes consistent with the module: batch=2, seq=8, embedding_dims=32,
    # mlp_size=32, forward_mul=2 -> hidden=64, mlp_dropout=0.1 (eval => identity).
    B, S, E = 2, 8, 32
    MLP_SIZE, FORWARD_MUL = 32, 2

    key = jax.random.PRNGKey(0)
    kx, kp = jax.random.split(key)
    x = jax.random.normal(kx, (B, S, E), jnp.float32)
    params = init_params(kp, E, MLP_SIZE, FORWARD_MUL)

    ref = _reference(x, params)

    # Performance default: bf16 MXU operands, f32 accumulation, weights VMEM-resident.
    prep_bf16 = prepare_params(params, compute_dtype=jnp.bfloat16)
    out_bf16 = jax.block_until_ready(mlp_block_forward(x, prep_bf16))
    assert out_bf16.shape == (B, S, E)
    assert jnp.allclose(out_bf16, ref, atol=5e-2, rtol=5e-2), "bf16 resident path mismatch"

    # Full-precision resident path: exact parity with the reference.
    prep_f32 = prepare_params(params, compute_dtype=jnp.float32)
    out_f32 = jax.block_until_ready(mlp_block_forward(x, prep_f32))
    assert jnp.allclose(out_f32, ref, atol=1e-4, rtol=1e-4), "f32 resident path mismatch"

    # Also exercise the H-chunked fallback plan (used when weights don't fit in VMEM).
    prep_tiled = prepare_params(params, compute_dtype=jnp.float32, th=128,
                                force_tiled=True)
    out_tiled = jax.block_until_ready(mlp_block_forward(x, prep_tiled))
    assert jnp.allclose(out_tiled, ref, atol=1e-4, rtol=1e-4), "tiled path mismatch"

    print("KERNEL_OK")
</pallas_src>

<mosaic_0001>
module attributes {stable_mosaic.version = 11 : i64} {
  func.func @_mlp_resident_kernel(%arg0: i32, %arg1: memref<8x128xf32, #tpu.memory_space<vmem>>, %arg2: memref<1x128xf32, #tpu.memory_space<vmem>>, %arg3: memref<1x128xf32, #tpu.memory_space<vmem>>, %arg4: memref<128x128xbf16, #tpu.memory_space<vmem>>, %arg5: memref<1x128xf32, #tpu.memory_space<vmem>>, %arg6: memref<128x128xbf16, #tpu.memory_space<vmem>>, %arg7: memref<1x128xf32, #tpu.memory_space<vmem>>, %arg8: memref<8x128xf32, #tpu.memory_space<vmem>>) attributes {dimension_semantics = [#tpu.dimension_semantics<parallel>], iteration_bounds = array<i64: 2>, scalar_prefetch = 0 : i64, scratch_operands = 0 : i64, tpu.core_type = #tpu.core_type<tc>, window_params = [{transform_indices = @transform_0, window_bounds = array<i64: 8, 128>}, {pipeline_mode = #tpu.pipeline_mode<synchronous>, transform_indices = @transform_1, window_bounds = array<i64: 1, 128>}, {pipeline_mode = #tpu.pipeline_mode<synchronous>, transform_indices = @transform_2, window_bounds = array<i64: 1, 128>}, {pipeline_mode = #tpu.pipeline_mode<synchronous>, transform_indices = @transform_3, window_bounds = array<i64: 128, 128>}, {pipeline_mode = #tpu.pipeline_mode<synchronous>, transform_indices = @transform_4, window_bounds = array<i64: 1, 128>}, {pipeline_mode = #tpu.pipeline_mode<synchronous>, transform_indices = @transform_5, window_bounds = array<i64: 128, 128>}, {pipeline_mode = #tpu.pipeline_mode<synchronous>, transform_indices = @transform_6, window_bounds = array<i64: 1, 128>}, {transform_indices = @transform_7, window_bounds = array<i64: 8, 128>}]} {
    %c0 = arith.constant 0 : index
    %c0_0 = arith.constant 0 : index
    %0 = vector.load %arg1[%c0, %c0_0] : memref<8x128xf32, #tpu.memory_space<vmem>>, vector<8x128xf32>
    %cst = arith.constant dense<0.000000e+00> : vector<8xf32>
    %1 = vector.multi_reduction <add>, %0, %cst [1] : vector<8x128xf32> to vector<8xf32>
    %2 = vector.shape_cast %1 : vector<8xf32> to vector<8x1xf32>
    %cst_1 = arith.constant 3.125000e-02 : f32
    %3 = vector.broadcast %cst_1 : f32 to vector<8x1xf32>
    %4 = arith.mulf %2, %3 : vector<8x1xf32>
    %5 = tpu.iota {dimensions = array<i32: 1>} : vector<8x128xi32>
    %c32_i32 = arith.constant 32 : i32
    %6 = vector.broadcast %c32_i32 : i32 to vector<8x128xi32>
    %7 = arith.cmpi slt, %5, %6 : vector<8x128xi32>
    %8 = vector.broadcast %4 : vector<8x1xf32> to vector<8x128xf32>
    %9 = arith.subf %0, %8 : vector<8x128xf32>
    %cst_2 = arith.constant 0.000000e+00 : f32
    %10 = vector.broadcast %cst_2 : f32 to vector<8x128xf32>
    %11 = arith.select %7, %9, %10 : vector<8x128xi1>, vector<8x128xf32>
    %12 = arith.mulf %11, %11 : vector<8x128xf32>
    %cst_3 = arith.constant dense<0.000000e+00> : vector<8xf32>
    %13 = vector.multi_reduction <add>, %12, %cst_3 [1] : vector<8x128xf32> to vector<8xf32>
    %14 = vector.shape_cast %13 : vector<8xf32> to vector<8x1xf32>
    %cst_4 = arith.constant 3.125000e-02 : f32
    %15 = vector.broadcast %cst_4 : f32 to vector<8x1xf32>
    %16 = arith.mulf %14, %15 : vector<8x1xf32>
    %cst_5 = arith.constant 9.99999974E-6 : f32
    %17 = vector.broadcast %cst_5 : f32 to vector<8x1xf32>
    %18 = arith.addf %16, %17 : vector<8x1xf32>
    %19 = math.rsqrt %18 : vector<8x1xf32>
    %20 = vector.broadcast %19 : vector<8x1xf32> to vector<8x128xf32>
    %21 = arith.mulf %11, %20 : vector<8x128xf32>
    %c0_6 = arith.constant 0 : index
    %c0_7 = arith.constant 0 : index
    %22 = vector.load %arg2[%c0_6, %c0_7] : memref<1x128xf32, #tpu.memory_space<vmem>>, vector<1x128xf32>
    %23 = vector.broadcast %22 : vector<1x128xf32> to vector<8x128xf32>
    %24 = arith.mulf %21, %23 : vector<8x128xf32>
    %c0_8 = arith.constant 0 : index
    %c0_9 = arith.constant 0 : index
    %25 = vector.load %arg3[%c0_8, %c0_9] : memref<1x128xf32, #tpu.memory_space<vmem>>, vector<1x128xf32>
    %26 = vector.broadcast %25 : vector<1x128xf32> to vector<8x128xf32>
    %27 = arith.addf %24, %26 : vector<8x128xf32>
    %28 = arith.truncf %27 : vector<8x128xf32> to vector<8x128xbf16>
    %c0_10 = arith.constant 0 : index
    %c0_11 = arith.constant 0 : index
    %29 = vector.load %arg4[%c0_10, %c0_11] : memref<128x128xbf16, #tpu.memory_space<vmem>>, vector<128x128xbf16>
    %cst_12 = arith.constant dense<0.000000e+00> : vector<8x128xf32>
    %30 = tpu.matmul %28, %29, %cst_12 {dimension_numbers = #tpu.dot_dimension_numbers<[1], [0], [0], [1], [0, 0, 1, 1], [], []>} : vector<8x128xbf16>, vector<128x128xbf16>, vector<8x128xf32> -> vector<8x128xf32>
    %c0_13 = arith.constant 0 : index
    %c0_14 = arith.constant 0 : index
    %31 = vector.load %arg5[%c0_13, %c0_14] : memref<1x128xf32, #tpu.memory_space<vmem>>, vector<1x128xf32>
    %32 = vector.broadcast %31 : vector<1x128xf32> to vector<8x128xf32>
    %33 = arith.addf %30, %32 : vector<8x128xf32>
    %cst_15 = arith.constant 5.000000e-01 : f32
    %34 = vector.broadcast %cst_15 : f32 to vector<8x128xf32>
    %35 = arith.mulf %34, %33 : vector<8x128xf32>
    %cst_16 = arith.constant 0.707106769 : f32
    %36 = vector.broadcast %cst_16 : f32 to vector<8x128xf32>
    %37 = arith.mulf %33, %36 : vector<8x128xf32>
    %38 = math.erf %37 : vector<8x128xf32>
    %cst_17 = arith.constant 1.000000e+00 : f32
    %39 = vector.broadcast %cst_17 : f32 to vector<8x128xf32>
    %40 = arith.addf %39, %38 : vector<8x128xf32>
    %41 = arith.mulf %35, %40 : vector<8x128xf32>
    %42 = arith.truncf %41 : vector<8x128xf32> to vector<8x128xbf16>
    %c0_18 = arith.constant 0 : index
    %c0_19 = arith.constant 0 : index
    %43 = vector.load %arg6[%c0_18, %c0_19] : memref<128x128xbf16, #tpu.memory_space<vmem>>, vector<128x128xbf16>
    %cst_20 = arith.constant dense<0.000000e+00> : vector<8x128xf32>
    %44 = tpu.matmul %42, %43, %cst_20 {dimension_numbers = #tpu.dot_dimension_numbers<[1], [0], [0], [1], [0, 0, 1, 1], [], []>} : vector<8x128xbf16>, vector<128x128xbf16>, vector<8x128xf32> -> vector<8x128xf32>
    %c0_21 = arith.constant 0 : index
    %c0_22 = arith.constant 0 : index
    %45 = vector.load %arg7[%c0_21, %c0_22] : memref<1x128xf32, #tpu.memory_space<vmem>>, vector<1x128xf32>
    %46 = vector.broadcast %45 : vector<1x128xf32> to vector<8x128xf32>
    %47 = arith.addf %44, %46 : vector<8x128xf32>
    %c0_23 = arith.constant 0 : index
    %c0_24 = arith.constant 0 : index
    %48 = vector.load %arg8[%c0_23, %c0_24] : memref<8x128xf32, #tpu.memory_space<vmem>>, vector<8x128xf32>
    tpu.vector_store %arg8[%c0_23, %c0_24], %47 {strides = array<i32>} : memref<8x128xf32, #tpu.memory_space<vmem>>, vector<8x128xf32>,
    return
  }
  func.func @transform_0(%arg0: i32) -> (i32, i32) {
    %c0_i32 = arith.constant 0 : i32
    %c0_i32_0 = arith.constant 0 : i32
    return %arg0, %c0_i32 : i32, i32
  }
  func.func @transform_1(%arg0: i32) -> (i32, i32) {
    %c0_i32 = arith.constant 0 : i32
    %c0_i32_0 = arith.constant 0 : i32
    %c0_i32_1 = arith.constant 0 : i32
    return %c0_i32, %c0_i32_0 : i32, i32
  }
  func.func @transform_2(%arg0: i32) -> (i32, i32) {
    %c0_i32 = arith.constant 0 : i32
    %c0_i32_0 = arith.constant 0 : i32
    %c0_i32_1 = arith.constant 0 : i32
    return %c0_i32, %c0_i32_0 : i32, i32
  }
  func.func @transform_3(%arg0: i32) -> (i32, i32) {
    %c0_i32 = arith.constant 0 : i32
    %c0_i32_0 = arith.constant 0 : i32
    %c0_i32_1 = arith.constant 0 : i32
    return %c0_i32, %c0_i32_0 : i32, i32
  }
  func.func @transform_4(%arg0: i32) -> (i32, i32) {
    %c0_i32 = arith.constant 0 : i32
    %c0_i32_0 = arith.constant 0 : i32
    %c0_i32_1 = arith.constant 0 : i32
    return %c0_i32, %c0_i32_0 : i32, i32
  }
  func.func @transform_5(%arg0: i32) -> (i32, i32) {
    %c0_i32 = arith.constant 0 : i32
    %c0_i32_0 = arith.constant 0 : i32
    %c0_i32_1 = arith.constant 0 : i32
    return %c0_i32, %c0_i32_0 : i32, i32
  }
  func.func @transform_6(%arg0: i32) -> (i32, i32) {
    %c0_i32 = arith.constant 0 : i32
    %c0_i32_0 = arith.constant 0 : i32
    %c0_i32_1 = arith.constant 0 : i32
    return %c0_i32, %c0_i32_0 : i32, i32
  }
  func.func @transform_7(%arg0: i32) -> (i32, i32) {
    %c0_i32 = arith.constant 0 : i32
    %c0_i32_0 = arith.constant 0 : i32
    return %arg0, %c0_i32 : i32, i32
  }
}

</mosaic_0001>

<bundles_post_ra>
// kernel: tpu_custom_call.1
= control target key start
LH: loop header
LB: loop body
LE: loop exit
PB: predicated region body
PF: predicated region fallthrough
CT: control target
= control target key end

     0   :  { %12 = vsyncpa [#allocation3], 0  ;;  %s1343_s0 = inlined_call_operand.hbm [shape: f32[16,128], index: 0, kind: input, shape index: {}]   ;;  %s1344_s1 = inlined_call_operand.vmem [shape: f32[1,128], index: 1, kind: input, shape index: {}]   ;;  %s1345_s2 = inlined_call_operand.vmem [shape: f32[1,128], index: 2, kind: input, shape index: {}]   ;;  %s1346_s3 = inlined_call_operand.hbm [shape: bf16[128,128], index: 3, kind: input, shape index: {}]   ;;  %s1347_s4 = inlined_call_operand.vmem [shape: f32[1,128], index: 4, kind: input, shape index: {}]   ;;  %s1348_s5 = inlined_call_operand.hbm [shape: bf16[128,128], index: 5, kind: input, shape index: {}]   ;;  %s1349_s6 = inlined_call_operand.vmem [shape: f32[1,128], index: 6, kind: input, shape index: {}]   ;;  %s1350_s7 = inlined_call_operand.hbm [shape: f32[16,128], index: 7, kind: output, shape index: {}]  }
   0x1   :  { %14 = vsyncpa [#allocation3 + $0x1], 0 }
   0x2   :  { %15 = vsyncpa [#allocation6], 0 }
   0x3   :  { %16 = vsyncpa [#allocation4], 0 }
   0x4   :  { %18 = vsyncpa [#allocation4 + $0x1], 0  ;;  %s1080_s24 = smov 0   ;;  %s1082_s25 = smov 0  }
   0x5   :  { %s1084_s26 = smov 0   ;;  %s1086_s27 = smov 0  }
   0x6 LB: > { %s1101_s28 = sadd.s32 4294967295, %s1030_s27   ;;  %s689_s29 = sadd.s32 4294967294, %s1030_s27   ;;  %s1030_s27 = sphi %s1086_s27, %s1370_s27   ;;  %s1026_s26 = sphi %s1084_s26, %s1369_s26   ;;  %s1022_s25 = sphi %s1082_s25, %s1368_s25   ;;  %s1018_s24 = sphi %s1080_s24, %s1367_s24  }
   0x7   : > { %p44_p0 = scmp.ne.s32.totalorder %s1022_s25, %s1018_s24  ;;  %p1351_p1 = scmp.eq.s32.totalorder %s1101_s28, 0 }
   0x8   : > { %p200_p3 = scmp.eq.s32.totalorder %s689_s29, 1  ;;  %p690_p5 = scmp.ge.s32.totalorder %s1030_s27, 1 }
   0x9   : > { %p1110_p4 = por %p1351_p1, %p44_p0  ;;  %p207_p7 = scmp.lt.s32.totalorder %s1030_s27, 3 }
   0xa   : > { %p1115_p6 = por %p200_p3, %p44_p0  ;;  %s1032_s10 = smov [#allocation5]  }
   0xb   : > { %s1354_s30 = scalar_select %p1110_p4, 1, 0 }
   0xc   : > { %s1355_s8 = scalar_select %p1115_p6, 1, 0 }
   0xd   : > { %p1120_p8 = pnand %p690_p5, %p207_p7  ;;  %s225_s11 = sshll.u32 %s1032_s10, 4  ;;  %s1124_s11 = int_to_ptr.vmem [resolvable:$true] %s225_s11 }
   0xe   : > { %s1033_s13 = smov [#allocation7]   ;;  %s874_s17 = scalar_lea.hbm %s1346_s3, 1024 }
   0xf   : > { %p795_p9 = pneg %p1120_p8  ;;  %s241_s14 = sshll.u32 %s1033_s13, 4  ;;  %s1135_s14 = int_to_ptr.vmem [resolvable:$true] %s241_s14 }
  0x10   : > { %p875_p12 = scmp.ne.s32.totalorder %s1346_s3, %s874_s17  ;;  %p881_p5 = scmp.lt.u32.totalorder %s874_s17, %s1346_s3 }
  0x11   : > { %p1131_p11 = pnand %p795_p9, %p1351_p1 }
  0x13   : > { %p876_p13 = pneg %p1131_p11 }
  0x15   : > { %p877_p0 = pnand %p876_p13, %p875_p12 }
  0x17   : > { %p878_p3 = pneg %p877_p0 }
  0x19   : > { %p883_p7 = pnand %p881_p5, %p878_p3 }
  0x1b   : > { %886 = shalt.err (!%p883_p7)
}
  0x1c   : > { %s887_s22 = scalar_lea.vmem %s1124_s11, 1024  ;;  %p895_p2 = scmp.lt.s32.totalorder %s1124_s11, %s1124_s11 }
  0x1d   : > { %p888_p9 = scmp.ne.s32.totalorder %s1124_s11, %s887_s22  ;;  %p896_p12 = scmp.lt.s32.totalorder %s887_s22, %s887_s22 }
  0x1f   : > { %p890_p10 = pnand %p888_p9, %p876_p13  ;;  %p897_p0 = por %p896_p12, %p895_p2 }
  0x21   : > { %p891_p1 = pneg %p890_p10 }
  0x23   : > { %p898_p6 = pnand %p897_p0, %p891_p1 }
  0x25   : > { %901 = shalt.err (!%p898_p6)
}
  0x26   : > { %s1034_s23 = smov 64   ;;  %s1035_s29 = smov 4  }
  0x27   : > { %798 = dma.hbm_to_vmem [thread:$0]  (!%p1131_p11), %s1346_s3, 1024, %s1124_s11, [#allocation6], %s1034_s23, %s1034_s23, %s1035_s29  }
  0x28   : > { %s902_s17 = scalar_lea.hbm %s1348_s5, 1024 }
  0x29   : > { %p903_p2 = scmp.ne.s32.totalorder %s1348_s5, %s902_s17  ;;  %p909_p10 = scmp.lt.u32.totalorder %s902_s17, %s1348_s5 }
  0x2b   : > { %p905_p1 = pnand %p903_p2, %p876_p13 }
  0x2d   : > { %p906_p6 = pneg %p905_p1 }
  0x2f   : > { %p911_p3 = pnand %p909_p10, %p906_p6 }
  0x31   : > { %914 = shalt.err (!%p911_p3)
}
  0x32   : > { %s915_s11 = scalar_lea.vmem %s1135_s14, 1024  ;;  %p923_p12 = scmp.lt.s32.totalorder %s1135_s14, %s1135_s14 }
  0x33   : > { %p916_p5 = scmp.ne.s32.totalorder %s1135_s14, %s915_s11  ;;  %p924_p0 = scmp.lt.s32.totalorder %s915_s11, %s915_s11 }
  0x35   : > { %p918_p7 = pnand %p916_p5, %p876_p13  ;;  %p925_p2 = por %p924_p0, %p923_p12 }
  0x37   : > { %p919_p9 = pneg %p918_p7 }
  0x39   : > { %p926_p1 = pnand %p925_p2, %p919_p9 }
  0x3b   : > { %929 = shalt.err (!%p926_p1)
}
  0x3c   : > { %801 = dma.hbm_to_vmem [thread:$0]  (!%p1131_p11), %s1348_s5, 1024, %s1135_s14, [#allocation6], %s1034_s23, %s1034_s23, %s1035_s29  }
  0x3d   : > { %s1190_s13 = sadd.s32 1, %s1030_s27   ;;  %s31_s12 = sadd.s32 1, %s1026_s26 }
  0x3e   : > { %s28_s15 = ssub.s32 %s1030_s27, %s1190_s13  ;;  %p38_p13 = scmp.ne.s32.totalorder %s1026_s26, %s1022_s25 }
  0x3f   : > { %p29_p6 = scmp.eq.s32.totalorder %s28_s15, 0  ;;  %p39_p10 = scmp.eq.s32.totalorder %s1030_s27, 0 }
  0x40   : > { %p1358_p3 = scmp.eq.s32.totalorder %s1101_s28, 1  ;;  %p812_p7 = scmp.lt.s32.totalorder %s1030_s27, 2 }
  0x41   : > { %s1206_s17 = scalar_select %p29_p6, %s1026_s26, %s31_s12  }
  0x42   : > { %p1200_p5 = por %p1358_p3, %p38_p13  ;;  %p40_p9 = por %p39_p10, %p38_p13 }
  0x43   : > { %s258_s18 = sand.u32 1, %s1026_s26   ;;  %s695_s14 = sshll.u32 %s1030_s27, 7 }
  0x44   : > { %s1359_s16 = scalar_select %p1200_p5, 1, 0 }
  0x45   : > { %s694_s19 = sshll.u32 %s258_s18, 3  ;;  %s1213_s20 = scalar_lea.hbm %s1343_s0, %s695_s14 }
  0x46   : > { %s262_s21 = scalar_lea.vmem [#allocation2], %s694_s19  ;;  %p1217_p11 = pnand %p812_p7, %p40_p9 }
  0x47   : > { %s269_s11 = sshll.u32 %s262_s21, 4  ;;  %s259_s10 = scalar_lea.sflag [#allocation3], %s258_s18  ;;  %s1215_s11 = int_to_ptr.vmem [resolvable:$true] %s269_s11 }
  0x48   : > { %s930_s12 = scalar_lea.hbm %s1213_s20, 128  ;;  %p932_p0 = pneg %p1217_p11 }
  0x49   : > { %p931_p12 = scmp.ne.s32.totalorder %s1213_s20, %s930_s12  ;;  %s935_s14 = scalar_lea.hbm %s1343_s0, 256 }
  0x4a   : > { %p936_p13 = scmp.lt.u32.totalorder %s1213_s20, %s1343_s0  ;;  %p937_p6 = scmp.lt.u32.totalorder %s935_s14, %s930_s12 }
  0x4b   : > { %p933_p2 = pnand %p932_p0, %p931_p12  ;;  %p939_p3 = scmp.lt.u32.totalorder %s930_s12, %s1213_s20 }
  0x4c   : > { %p938_p10 = por %p937_p6, %p936_p13 }
  0x4d   : > { %p934_p1 = pneg %p933_p2 }
  0x4e   : > { %p940_p7 = por %p939_p3, %p938_p10 }
  0x50   : > { %p941_p9 = pnand %p940_p7, %p934_p1 }
  0x52   : > { %944 = shalt.err (!%p941_p9)
}
  0x53   : > { %s945_s18 = scalar_lea.vmem %s1215_s11, 128  ;;  %s1036_s21 = smov [#allocation2]  }
  0x54   : > { %p946_p12 = scmp.ne.s32.totalorder %s1215_s11, %s945_s18  ;;  %s950_s15 = sshll.u32 %s1036_s21, 4  ;;  %s951_s15 = int_to_ptr.vmem [resolvable:$false] %s950_s15 }
  0x55   : > { %s952_s19 = scalar_lea.vmem %s951_s15, 256  ;;  %p953_p4 = scmp.lt.s32.totalorder %s1215_s11, %s951_s15 }
  0x56   : > { %p948_p2 = pnand %p946_p12, %p932_p0  ;;  %p954_p13 = scmp.lt.s32.totalorder %s952_s19, %s945_s18 }
  0x58   : > { %p949_p5 = pneg %p948_p2  ;;  %p955_p6 = por %p954_p13, %p953_p4 }
  0x5a   : > { %p956_p10 = pnand %p955_p6, %p949_p5 }
  0x5c   : > { %959 = shalt.err (!%p956_p10)
}
  0x5d   : > { %805 = dma.hbm_to_vmem [thread:$0]  (!%p1217_p11), %s1213_s20, 128, %s1215_s11, %s259_s10  }
  0x5e   : > { %278 = sbr.rel (%p1120_p8) target bundleno = 881 (0x371), region = 48  ;;  %s1249_s12 = sand.u32 (!%p1120_p8), 1, %s1022_s25  }
  0x5f   : > { %s697_s14 = sshll.u32 (!%p1120_p8), %s1249_s12, 3  ;;  %s281_s23 = scalar_lea.sflag (!%p1120_p8), [#allocation3], %s1249_s12 }
  0x60   : > { %s284_s29 = scalar_lea.vmem (!%p1120_p8), [#allocation2], %s697_s14  ;;  %p1361_p4 = scmp.ne.s32.totalorder (!%p1120_p8), %s1354_s30, 0 }
  0x65   : > { %1005 = dma.done.wait (%p1361_p4), %s281_s23, 128  }
  0x66   : > { %1007 = vsyncadd (%p1361_p4), %s281_s23, 4294967168  ;;  %p1362_p5 = scmp.eq.s32.totalorder %s1101_s28, 0 }
  0x68   : > { %1009 = dma.done.wait (%p1362_p5), [#allocation6], 2048   ;;  %p1363_p8 = pmov %p1362_p5 }
  0x69   : > { %v324_v0 = vld [vmem:[%s284_s29] sm:$0xff]  ;;  %v854_v1 = vld [vmem:[#allocation5] sm:$0xff]   ;;  %v1037_v2 = vmov 0.0   ;;  %v855_v3 = vld [vmem:[#allocation5 + $0x8] sm:$0xff]   ;;  %v328_v4 = vlaneseq  ;;  %vm1038_vm1 = vmmov 0   ;;  %s722_s15 = sshll.u32 %s1101_s28, 7 }
  0x6a   : > { %1011 = vsyncadd (%p1363_p8), [#allocation6], 4294965248  ;;  %325 = vadd.xlane.f32.xlu0 %v324_v0  ;;  %743 = vmatprep.subr.bf16.mxu0 %v1037_v2  ;;  %v856_v11 = vld [vmem:[#allocation5 + $0x10] sm:$0xff]   ;;  %v857_v12 = vld [vmem:[#allocation5 + $0x18] sm:$0xff]   ;;  %s322_s19 = scalar_lea.vmem [#allocation8], %s697_s14  ;;  %s1299_s9 = scalar_lea.hbm %s1350_s7, %s722_s15 }
  0x6b   : > { %763 = vmatprep.subr.bf16.mxu1 %v1037_v2  ;;  %744 = vmatpush3.bf16.msra.mxu0 %v854_v1  ;;  %v329_v5 = vand.u32 127, %v328_v4  ;;  %v858_v13 = vld [vmem:[#allocation5 + $0x20] sm:$0xff]   ;;  %v859_v14 = vld [vmem:[#allocation5 + $0x28] sm:$0xff]   ;;  %v860_v15 = vld [vmem:[#allocation5 + $0x30] sm:$0xff]   ;;  %s600_s23 = sshll.u32 %s322_s19, 4  ;;  %s587_s28 = scalar_lea.sflag [#allocation4], %s1249_s12  ;;  %s1301_s23 = int_to_ptr.vmem [resolvable:$true] %s600_s23 }
  0x6c   : > { %745 = vmatprep.subr.bf16.mxu0 %v1037_v2  ;;  %759 = vmatprep.mubr.msk.bf16.mxu0 %vm1038_vm1, %v1037_v2  ;;  %v861_v16 = vld [vmem:[#allocation5 + $0x38] sm:$0xff]   ;;  %v862_v17 = vld [vmem:[#allocation7] sm:$0xff]   ;;  %v863_v18 = vld [vmem:[#allocation7 + $0x8] sm:$0xff]   ;;  %s960_s20 = scalar_lea.vmem %s1301_s23, 128  ;;  %p1364_p0 = scmp.ne.s32.totalorder %s1359_s16, 0 }
  0x6d   : > { %vm330_vm0 = vcmp.lt.s32.totalorder %v329_v5, 32  ;;  %779 = vmatprep.mubr.msk.bf16.mxu1 %vm1038_vm1, %v1037_v2  ;;  %764 = vmatpush3.bf16.msra.mxu1 %v862_v17  ;;  %v864_v19 = vld [vmem:[#allocation7 + $0x10] sm:$0xff]   ;;  %v865_v30 = vld [vmem:[#allocation7 + $0x18] sm:$0xff]   ;;  %v866_v31 = vld [vmem:[#allocation7 + $0x20] sm:$0xff]   ;;  %p961_p11 = scmp.ne.s32.totalorder %s1301_s23, %s960_s20  ;;  %s1039_s14 = smov [#allocation8]  }
  0x6e   : > { %765 = vmatprep.subr.bf16.mxu1 %v1037_v2  ;;  %v701_v24 = vld [vmem:[%s1344_s1] ss:$0 sm:$0xff]  ;;  %v867_v32 = vld [vmem:[#allocation7 + $0x28] sm:$0xff]   ;;  %v869_v34 = vld [vmem:[#allocation7 + $0x38] sm:$0xff]   ;;  %s964_s11 = sshll.u32 %s1039_s14, 4  ;;  %s965_s11 = int_to_ptr.vmem [resolvable:$false] %s964_s11 }
  0x6f   : > { %746 = vmatpush3.bf16.msra.mxu0 %v855_v3  ;;  %v702_v26 = vld [vmem:[%s1345_s2] ss:$0 sm:$0xff]  ;;  %p962_p1 = pnand %p961_p11, %p1364_p0  ;;  %s966_s22 = scalar_lea.vmem %s965_s11, 256 }
  0x70   : > { %747 = vmatprep.subr.bf16.mxu0 %v1037_v2  ;;  %v868_v33 = vld [vmem:[#allocation7 + $0x30] sm:$0xff]   ;;  %p967_p7 = scmp.lt.s32.totalorder %s1301_s23, %s965_s11  ;;  %p968_p9 = scmp.lt.s32.totalorder %s966_s22, %s960_s20 }
  0x71   : > { %766 = vmatpush3.bf16.msra.mxu1 %v863_v18  ;;  %v703_v35 = vld [vmem:[%s1347_s4] ss:$0 sm:$0xff]  ;;  %p963_p3 = pneg %p962_p1 }
  0x72   : > { %767 = vmatprep.subr.bf16.mxu1 %v1037_v2  ;;  %v712_v47 = vld [vmem:[%s1349_s6] ss:$0 sm:$0xff]  ;;  %p969_p12 = por %p968_p9, %p967_p7 }
  0x73   : > { %748 = vmatpush3.bf16.msra.mxu0 %v856_v11 }
  0x74   : > { %749 = vmatprep.subr.bf16.mxu0 %v1037_v2  ;;  %p970_p2 = pnand %p969_p12, %p963_p3 }
  0x75   : > { %768 = vmatpush3.bf16.msra.mxu1 %v864_v19 }
  0x76   : > { %769 = vmatprep.subr.bf16.mxu1 %v1037_v2 }
  0x77   : > { %750 = vmatpush3.bf16.msra.mxu0 %v857_v12 }
  0x78   : > { %751 = vmatprep.subr.bf16.mxu0 %v1037_v2 }
  0x79   : > { %770 = vmatpush3.bf16.msra.mxu1 %v865_v30 }
  0x7a   : > { %771 = vmatprep.subr.bf16.mxu1 %v1037_v2 }
  0x7b   : > { %752 = vmatpush3.bf16.msra.mxu0 %v858_v13 }
  0x7c   : > { %753 = vmatprep.subr.bf16.mxu0 %v1037_v2 }
  0x7d   : > { %772 = vmatpush3.bf16.msra.mxu1 %v866_v31 }
  0x7e   : > { %773 = vmatprep.subr.bf16.mxu1 %v1037_v2 }
  0x7f   : > { %754 = vmatpush3.bf16.msra.mxu0 %v859_v14 }
  0x80   : > { %755 = vmatprep.subr.bf16.mxu0 %v1037_v2 }
  0x81   : > { %774 = vmatpush3.bf16.msra.mxu1 %v867_v32 }
  0x82   : > { %775 = vmatprep.subr.bf16.mxu1 %v1037_v2 }
  0x83   : > { %756 = vmatpush3.bf16.msra.mxu0 %v860_v15 }
  0x84   : > { %757 = vmatprep.subr.bf16.mxu0 %v1037_v2 }
  0x85   : > { %776 = vmatpush3.bf16.msra.mxu1 %v868_v33 }
  0x86   : > { %777 = vmatprep.subr.bf16.mxu1 %v1037_v2 }
  0x87   : > { %758 = vmatpush3.bf16.msra.mxu0 %v861_v16 }
  0x89   : > { %778 = vmatpush3.bf16.msra.mxu1 %v869_v34 }
  0xf7   : > { %v326_v6 = vpop.xlane.xlu0 %325 }
  0xf8   : > { %v327_v7 = vmul.f32 0.03125, %v326_v6 }
  0xfa   : > { %v331_v8 = vsub.f32 %v324_v0, %v327_v7 }
  0xfc   : > { %v332_v9 = vsel %vm330_vm0, %v331_v8, 0.0 }
  0xfd   : > { %v333_v10 = vmul.f32 %v332_v9, %v332_v9 }
  0xff   : > { %334 = vadd.xlane.f32.xlu0 %v333_v10 }
 0x18c   : > { %v335_v20 = vpop.xlane.xlu0 %334 }
 0x18d   : > { %v336_v21 = vmul.f32 0.03125, %v335_v20 }
 0x18f   : > { %v337_v22 = vadd.f32 1e-05, %v336_v21 }
 0x191   : > { %870 = vrsqrt.f32 %v337_v22 }
 0x19b   : > { %v871_v23 = vpop.eup %870 }
 0x19c   : > { %v339_v25 = vmul.f32 %v871_v23, %v332_v9 }
 0x19e   : > { %v347_v27 = vmul.f32 %v701_v24, %v339_v25 }
 0x1a0   : > { %v355_v28 = vadd.f32 %v702_v26, %v347_v27 }
 0x1a2   : > { %v356_v29 = vpack.c.bf16 %v355_v28, %v355_v28 }
 0x1a4   : > { %760 = vmatmul.mubr.bf16.vlgmr.msra.gmra.mrb[0].mxu0 %v356_v29 }
 0x277   : > { %v462_v36 = vpop.f32.mrb[0].mxu0 }
 0x278   : > { %v463_v37 = vadd.f32 %v703_v35, %v462_v36  ;;  %v761_v38 = vpop.f32.mrb[1].mxu0 }
 0x279   : > { %v465_v39 = vpop.f32.mrb[2].mxu0 }
 0x27a   : > { %v469_v40 = vmul.f32 0.70710677, %v463_v37  ;;  %v762_v41 = vpop.f32.mrb[3].mxu0  ;;  %v468_v43 = vmul.f32 0.5, %v463_v37 }
 0x27c   : > { %872 = verf.f32 %v469_v40 }
 0x286   : > { %v873_v42 = vpop.eup %872 }
 0x287   : > { %v471_v44 = vadd.f32 1.0, %v873_v42 }
 0x289   : > { %v472_v45 = vmul.f32 %v471_v44, %v468_v43 }
 0x28b   : > { %v473_v46 = vpack.c.bf16 %v472_v45, %v472_v45 }
 0x28d   : > { %780 = vmatmul.mubr.bf16.vlgmr.msra.gmra.mrb[0].mxu1 %v473_v46 }
 0x360   : > { %v579_v48 = vpop.f32.mrb[0].mxu1 }
 0x361   : > { %v580_v49 = vadd.f32 %v712_v47, %v579_v48  ;;  %v781_v50 = vpop.f32.mrb[1].mxu1 }
 0x362   : > { %v582_v51 = vpop.f32.mrb[2].mxu1 }
 0x363   : > { %585 = vst [vmem:[%s322_s19] sm:$0xff] %v580_v49  ;;  %v782_v52 = vpop.f32.mrb[3].mxu1 }
 0x364   : > { %973 = shalt.err (!%p970_p2)
}
 0x365   : > { %s974_s12 = scalar_lea.hbm %s1299_s9, 128  ;;  %s978_s21 = scalar_lea.hbm %s1350_s7, 256 }
 0x366   : > { %p975_p13 = scmp.ne.s32.totalorder %s1299_s9, %s974_s12  ;;  %p979_p4 = scmp.lt.u32.totalorder %s1299_s9, %s1350_s7 }
 0x367   : > { %p980_p5 = scmp.lt.u32.totalorder %s978_s21, %s974_s12  ;;  %p982_p11 = scmp.lt.u32.totalorder %s974_s12, %s1299_s9 }
 0x368   : > { %p976_p6 = pnand %p975_p13, %p1364_p0 }
 0x369   : > { %p981_p8 = por %p980_p5, %p979_p4 }
 0x36a   : > { %p977_p10 = pneg %p976_p6 }
 0x36b   : > { %p983_p1 = por %p982_p11, %p981_p8 }
 0x36d   : > { %p984_p3 = pnand %p983_p1, %p977_p10 }
 0x36f   : > { %987 = shalt.err (!%p984_p3)
}
 0x370   : > { %793 = dma.vmem_to_hbm [thread:$0]  (%p1364_p0), %s1301_s23, 128, %s1299_s9, %s587_s28  }
 0x371 PF: > { %s612_s29 = sand.u32 1, %s1018_s24   ;;  %p1365_p7 = scmp.ne.s32.totalorder %s1355_s8, 0 }
 0x372   : > { %p1366_p9 = scmp.ge.s32.totalorder %s1030_s27, 2  ;;  %s613_s30 = scalar_lea.sflag [#allocation4], %s612_s29 }
 0x374   : > { %p807_p12 = pnand %p1366_p9, %p1365_p7 }
 0x376   : > { %1013 = dma.done.wait (!%p807_p12), %s613_s30, 128  }
 0x377   : > { %1015 = vsyncadd (!%p807_p12), %s613_s30, 4294967168  ;;  %p21_p2 = scmp.ge.s32.totalorder %s1190_s13, 4   ;;  %s1367_s24 = smov %s1022_s25 }
 0x378   : > { %s1368_s25 = smov %s1026_s26  ;;  %s1369_s26 = smov %s1206_s17 }
 0x379   : > { %s1370_s27 = smov %s1190_s13  ;;  %23 = sbr.rel (!%p21_p2) target bundleno = 6 (0x6), region = 101 }
 0x380   :  { %618 = vsyncpa [#allocation3], 1 }
 0x381   :  { %620 = vsyncpa [#allocation3 + $0x1], 1 }
 0x382   :  { %621 = vsyncpa [#allocation6], 1 }
 0x383   :  { %622 = vsyncpa [#allocation4], 1 }
 0x384   :  { %624 = vsyncpa [#allocation4 + $0x1], 1 }

</bundles_post_ra>
